<compile_context>
chip_gen: v7x
topology: tpu7x:2x2x1
jax: 0.10.0
libtpu: 0.0.40
codegen_flags: <defaults>
</compile_context>

<pallas_src>
import functools

import jax
import jax.numpy as jnp
from jax import lax
from jax.experimental import pallas as pl
from jax.experimental.pallas import tpu as pltpu

_LANES = 128


def _ceil_div(a, b):
    return -(-a // b)


def _num_tensorcores():
    """Best-effort TensorCore count (2 on v7x, 1 on v5e/v6e); safe fallback 1."""
    try:
        info = pltpu.get_tpu_info()
        for attr in ("num_cores", "num_tensorcores", "tensorcore_count",
                     "cores_per_chip", "core_count"):
            v = getattr(info, attr, None)
            if v:
                return max(1, int(v))
    except Exception:
        pass
    return 1


def _focal_loss_kernel(pred_ref, gt_ref, acc_ref, *,
                       rows, row_tile, steps_per_core, needs_mask):
    j = pl.program_id(1)

    @pl.when(j == 0)
    def _init():
        acc_ref[...] = jnp.zeros_like(acc_ref)

    pred = pred_ref[...].astype(jnp.float32)
    gt = gt_ref[...].astype(jnp.float32)

    is_pos = gt == 1.0
    pos_f = is_pos.astype(jnp.float32)

    # Fused pos/neg branches around one EUP log per element.
    one_m_pred = 1.0 - pred
    sel = jnp.where(is_pos, pred, one_m_pred)     # log argument
    base = 1.0 - sel                              # (1-pred) for pos, pred for neg
    w = base * base
    one_m_gt = jnp.maximum(1.0 - gt, 0.0)         # gt>1 (and pad sentinel) -> 0 weight,
    ng2 = one_m_gt * one_m_gt                     # exactly matching gt.lt(1) semantics
    neg_w = ng2 * ng2                             # (1-gt)^4
    weight = w * jnp.where(is_pos, 1.0, neg_w)
    # NOTE: pred==0 (gt==1) or pred==1 (gt<1) gives log(0) = -inf, matching the
    # PyTorch reference's behavior.
    contrib = jnp.log(sel) * weight               # per-element pos_loss + neg_loss

    fold = row_tile // 8

    def _accum(c, pf):
        # Pure-VPU fold (rt,128) -> (8,128); the reshape splits the leading dim
        # on an (8,128)-tile boundary, so no relayout is generated.
        lf = jnp.sum(c.reshape(fold, 8, _LANES), axis=0)
        nf = jnp.sum(pf.reshape(fold, 8, _LANES), axis=0)
        acc_ref[0, 0:8, :] += lf
        acc_ref[0, 8:16, :] += nf

    if needs_mask:
        p = pl.program_id(0)
        row0 = (p * steps_per_core + j) * row_tile
        is_full = row0 + row_tile <= rows

        @pl.when(is_full)
        def _fast():
            _accum(contrib, pos_f)

        @pl.when(jnp.logical_not(is_full))
        def _masked():
            # Only the partial / clamp-duplicated last block pays the iota mask.
            ridx = row0 + lax.broadcasted_iota(jnp.int32, (row_tile, _LANES), 0)
            valid = ridx < rows
            _accum(jnp.where(valid, contrib, 0.0), jnp.where(valid, pos_f, 0.0))
    else:
        _accum(contrib, pos_f)


def _tail_partial_sums(pred, gt):
    """Pure-JAX partial sums for a tiny (<128 elem) ragged tail."""
    pred = pred.astype(jnp.float32)
    gt = gt.astype(jnp.float32)
    is_pos = gt == 1.0
    pos_f = is_pos.astype(jnp.float32)
    sel = jnp.where(is_pos, pred, 1.0 - pred)
    base = 1.0 - sel
    one_m_gt = jnp.maximum(1.0 - gt, 0.0)
    neg_w = (one_m_gt * one_m_gt) ** 2
    weight = base * base * jnp.where(is_pos, 1.0, neg_w)
    contrib = jnp.log(sel) * weight
    return jnp.sum(contrib), jnp.sum(pos_f)


def focal_loss(pred, gt, *, row_tile=2048, num_partials=None):
    """Pallas TPU implementation of CornerNet focal loss. Returns a scalar f32."""
    assert pred.shape == gt.shape, (pred.shape, gt.shape)

    pred_f = pred.reshape(-1)
    gt_f = gt.reshape(-1)
    if pred_f.dtype not in (jnp.float32, jnp.bfloat16):
        pred_f = pred_f.astype(jnp.float32)
    if gt_f.dtype not in (jnp.float32, jnp.bfloat16):
        gt_f = gt_f.astype(jnp.float32)

    n = pred_f.shape[0]

    # Ragged tail (n not a multiple of 128): <128 elements handled by a tiny
    # pure-JAX reduction so the bulk path stays a zero-copy reshape (no O(n) pad).
    tail_loss = jnp.float32(0.0)
    tail_npos = jnp.float32(0.0)
    rem = n % _LANES
    if rem:
        tail_loss, tail_npos = _tail_partial_sums(pred_f[n - rem:], gt_f[n - rem:])
        pred_f = pred_f[: n - rem]
        gt_f = gt_f[: n - rem]

    rows = (n - rem) // _LANES
    if rows == 0:
        # Degenerate tiny input (< 128 elements): pure-JAX only.
        total_loss = tail_loss
        num_pos = tail_npos
        return jnp.where(num_pos == 0.0, -total_loss, -total_loss / num_pos)

    pred2 = pred_f.reshape(rows, _LANES)
    gt2 = gt_f.reshape(rows, _LANES)

    # Minimum sublane multiple for the narrowest dtype present.
    sub = 16 if (pred_f.dtype == jnp.bfloat16 or gt_f.dtype == jnp.bfloat16) else 8

    # Effective row tile: multiple of `sub`, no larger than the array.
    rt = min(row_tile, rows)
    rt = max(sub, (rt // sub) * sub)

    grid_m = _ceil_div(rows, rt)                  # number of row blocks
    if num_partials is None:
        num_partials = _num_tensorcores()         # 1 on v5e/v6e, 2 on v7x
    npar = max(1, min(num_partials, grid_m))      # "parallel" axis
    steps = _ceil_div(grid_m, npar)               # reduction steps per core

    needs_clamp = (npar * steps) > grid_m
    needs_mask = needs_clamp or (grid_m * rt != rows)
    last_block = grid_m - 1

    if needs_clamp:
        def in_map(p, j, *, s=steps, lb=last_block):
            return (jnp.minimum(p * s + j, lb), 0)
    else:
        def in_map(p, j, *, s=steps):
            return (p * s + j, 0)

    kernel = functools.partial(
        _focal_loss_kernel,
        rows=rows, row_tile=rt, steps_per_core=steps, needs_mask=needs_mask)

    n_proc = rows * _LANES
    cost = pl.CostEstimate(
        flops=int(14 * n_proc),
        transcendentals=int(n_proc),
        bytes_accessed=int(n_proc * (pred_f.dtype.itemsize + gt_f.dtype.itemsize)
                           + npar * 16 * _LANES * 4),
    )

    acc = pl.pallas_call(
        kernel,
        out_shape=jax.ShapeDtypeStruct((npar, 16, _LANES), jnp.float32),
        grid_spec=pltpu.PrefetchScalarGridSpec(
            num_scalar_prefetch=0,
            grid=(npar, steps),
            in_specs=[
                pl.BlockSpec((rt, _LANES), in_map),
                pl.BlockSpec((rt, _LANES), in_map),
            ],
            out_specs=pl.BlockSpec((1, 16, _LANES), lambda p, j: (p, 0, 0)),
        ),
        compiler_params=pltpu.CompilerParams(
            dimension_semantics=("parallel", "arbitrary")),
        cost_estimate=cost,
    )(pred2, gt2)

    # Tiny XLA epilogue: reduce the (npar, 16, 128) vector partials (loss in
    # sublanes 0-7, num_pos in 8-15) and do the scalar combine. pos_loss is
    # exactly 0 whenever num_pos == 0, so the single fused sum keeps the
    # original `if num_pos == 0` semantics exact.
    total_loss = jnp.sum(acc[:, 0:8, :]) + tail_loss
    num_pos = jnp.sum(acc[:, 8:16, :]) + tail_npos
    return jnp.where(num_pos == 0.0, -total_loss, -total_loss / num_pos)


def focal_loss_ref(pred, gt):
    """Pure-JAX reference matching the PyTorch module semantics."""
    pred = pred.astype(jnp.float32)
    gt = gt.astype(jnp.float32)
    pos_inds = (gt == 1.0).astype(jnp.float32)
    neg_inds = (gt < 1.0).astype(jnp.float32)
    neg_weights = (1.0 - gt) ** 4
    pos_loss = jnp.log(pred) * (1.0 - pred) ** 2 * pos_inds
    neg_loss = jnp.log(1.0 - pred) * pred ** 2 * neg_weights * neg_inds
    num_pos = pos_inds.sum()
    pos_loss = pos_loss.sum()
    neg_loss = neg_loss.sum()
    return jnp.where(num_pos == 0.0, -neg_loss, -(pos_loss + neg_loss) / num_pos)


if __name__ == "__main__":
    key = jax.random.PRNGKey(0)
    k_pred, k_gt, k_pos = jax.random.split(key, 3)

    N, C, H, W = 2, 4, 16, 16  # NCHW, matching the PyTorch convention

    # pred: sigmoid-like scores strictly inside (0, 1)
    pred = jax.random.uniform(k_pred, (N, C, H, W), minval=1e-4, maxval=1.0 - 1e-4)

    # gt: Gaussian-splatted heatmap in [0, 1) with a few exact 1.0 peaks
    gt_soft = jax.random.uniform(k_gt, (N, C, H, W), minval=0.0, maxval=0.999)
    peaks = jax.random.uniform(k_pos, (N, C, H, W)) < 0.05
    gt = jnp.where(peaks, 1.0, gt_soft)

    loss = jax.block_until_ready(focal_loss(pred, gt))
    ref = jax.block_until_ready(focal_loss_ref(pred, gt))

    assert jnp.isfinite(loss), f"non-finite loss: {loss}"
    assert jnp.allclose(loss, ref, rtol=1e-4, atol=1e-4), f"kernel={loss} ref={ref}"
    print("KERNEL_OK")
</pallas_src>

<mosaic_0001>
module attributes {stable_mosaic.version = 11 : i64} {
  func.func @_focal_loss_kernel(%arg0: i32, %arg1: i32, %arg2: memref<16x128xf32, #tpu.memory_space<vmem>>, %arg3: memref<16x128xf32, #tpu.memory_space<vmem>>, %arg4: memref<1x16x128xf32, #tpu.memory_space<vmem>>) attributes {dimension_semantics = [#tpu.dimension_semantics<parallel>, #tpu.dimension_semantics<arbitrary>], iteration_bounds = array<i64: 1, 1>, scalar_prefetch = 0 : i64, scratch_operands = 0 : i64, tpu.core_type = #tpu.core_type<tc>, window_params = [{transform_indices = @transform_0, window_bounds = array<i64: 16, 128>}, {transform_indices = @transform_1, window_bounds = array<i64: 16, 128>}, {transform_indices = @transform_2, window_bounds = array<i64: 1, 16, 128>}]} {
    %c0_i32 = arith.constant 0 : i32
    %0 = arith.cmpi eq, %arg1, %c0_i32 : i32
    %1 = arith.extui %0 : i1 to i32
    %c0_i32_0 = arith.constant 0 : i32
    %2 = arith.cmpi ne, %1, %c0_i32_0 : i32
    scf.if %2 {
      %cst_22 = arith.constant 0.000000e+00 : f32
      %42 = vector.broadcast %cst_22 : f32 to vector<1x16x128xf32>
      %c0_23 = arith.constant 0 : index
      %c0_24 = arith.constant 0 : index
      %c0_25 = arith.constant 0 : index
      %43 = vector.load %arg4[%c0_23, %c0_24, %c0_25] : memref<1x16x128xf32, #tpu.memory_space<vmem>>, vector<1x16x128xf32>
      tpu.vector_store %arg4[%c0_23, %c0_24, %c0_25], %42 {strides = array<i32>} : memref<1x16x128xf32, #tpu.memory_space<vmem>>, vector<1x16x128xf32>,
    } else {
    }
    %c0 = arith.constant 0 : index
    %c0_1 = arith.constant 0 : index
    %3 = vector.load %arg2[%c0, %c0_1] : memref<16x128xf32, #tpu.memory_space<vmem>>, vector<16x128xf32>
    %c0_2 = arith.constant 0 : index
    %c0_3 = arith.constant 0 : index
    %4 = vector.load %arg3[%c0_2, %c0_3] : memref<16x128xf32, #tpu.memory_space<vmem>>, vector<16x128xf32>
    %cst = arith.constant 1.000000e+00 : f32
    %5 = vector.broadcast %cst : f32 to vector<16x128xf32>
    %6 = arith.cmpf oeq, %4, %5 : vector<16x128xf32>
    %7 = arith.extui %6 : vector<16x128xi1> to vector<16x128xi32>
    %8 = arith.sitofp %7 : vector<16x128xi32> to vector<16x128xf32>
    %cst_4 = arith.constant 1.000000e+00 : f32
    %9 = vector.broadcast %cst_4 : f32 to vector<16x128xf32>
    %10 = arith.subf %9, %3 : vector<16x128xf32>
    %11 = arith.select %6, %3, %10 : vector<16x128xi1>, vector<16x128xf32>
    %cst_5 = arith.constant 1.000000e+00 : f32
    %12 = vector.broadcast %cst_5 : f32 to vector<16x128xf32>
    %13 = arith.subf %12, %11 : vector<16x128xf32>
    %14 = arith.mulf %13, %13 : vector<16x128xf32>
    %cst_6 = arith.constant 1.000000e+00 : f32
    %15 = vector.broadcast %cst_6 : f32 to vector<16x128xf32>
    %16 = arith.subf %15, %4 : vector<16x128xf32>
    %cst_7 = arith.constant 0.000000e+00 : f32
    %17 = vector.broadcast %cst_7 : f32 to vector<16x128xf32>
    %18 = arith.maximumf %16, %17 : vector<16x128xf32>
    %19 = arith.mulf %18, %18 : vector<16x128xf32>
    %20 = arith.mulf %19, %19 : vector<16x128xf32>
    %cst_8 = arith.constant 1.000000e+00 : f32
    %21 = vector.broadcast %cst_8 : f32 to vector<16x128xf32>
    %22 = arith.select %6, %21, %20 : vector<16x128xi1>, vector<16x128xf32>
    %23 = arith.mulf %14, %22 : vector<16x128xf32>
    %24 = math.log %11 : vector<16x128xf32>
    %25 = arith.mulf %24, %23 : vector<16x128xf32>
    %26 = vector.shape_cast %25 : vector<16x128xf32> to vector<2x8x128xf32>
    %cst_9 = arith.constant dense<0.000000e+00> : vector<8x128xf32>
    %27 = vector.multi_reduction <add>, %26, %cst_9 [0] : vector<2x8x128xf32> to vector<8x128xf32>
    %28 = vector.shape_cast %8 : vector<16x128xf32> to vector<2x8x128xf32>
    %cst_10 = arith.constant dense<0.000000e+00> : vector<8x128xf32>
    %29 = vector.multi_reduction <add>, %28, %cst_10 [0] : vector<2x8x128xf32> to vector<8x128xf32>
    %c0_11 = arith.constant 0 : index
    %c0_12 = arith.constant 0 : index
    %c0_13 = arith.constant 0 : index
    %30 = vector.load %arg4[%c0_11, %c0_12, %c0_13] : memref<1x16x128xf32, #tpu.memory_space<vmem>>, vector<1x8x128xf32>
    %31 = vector.shape_cast %30 : vector<1x8x128xf32> to vector<8x128xf32>
    %32 = arith.addf %31, %27 : vector<8x128xf32>
    %c0_14 = arith.constant 0 : index
    %c0_15 = arith.constant 0 : index
    %c0_16 = arith.constant 0 : index
    %33 = vector.load %arg4[%c0_14, %c0_15, %c0_16] : memref<1x16x128xf32, #tpu.memory_space<vmem>>, vector<1x8x128xf32>
    %34 = vector.shape_cast %33 : vector<1x8x128xf32> to vector<8x128xf32>
    %35 = vector.shape_cast %32 : vector<8x128xf32> to vector<1x8x128xf32>
    tpu.vector_store %arg4[%c0_14, %c0_15, %c0_16], %35 {strides = array<i32>} : memref<1x16x128xf32, #tpu.memory_space<vmem>>, vector<1x8x128xf32>,
    %c0_17 = arith.constant 0 : index
    %c8 = arith.constant 8 : index
    %c0_18 = arith.constant 0 : index
    %36 = vector.load %arg4[%c0_17, %c8, %c0_18] : memref<1x16x128xf32, #tpu.memory_space<vmem>>, vector<1x8x128xf32>
    %37 = vector.shape_cast %36 : vector<1x8x128xf32> to vector<8x128xf32>
    %38 = arith.addf %37, %29 : vector<8x128xf32>
    %c0_19 = arith.constant 0 : index
    %c8_20 = arith.constant 8 : index
    %c0_21 = arith.constant 0 : index
    %39 = vector.load %arg4[%c0_19, %c8_20, %c0_21] : memref<1x16x128xf32, #tpu.memory_space<vmem>>, vector<1x8x128xf32>
    %40 = vector.shape_cast %39 : vector<1x8x128xf32> to vector<8x128xf32>
    %41 = vector.shape_cast %38 : vector<8x128xf32> to vector<1x8x128xf32>
    tpu.vector_store %arg4[%c0_19, %c8_20, %c0_21], %41 {strides = array<i32>} : memref<1x16x128xf32, #tpu.memory_space<vmem>>, vector<1x8x128xf32>,
    return
  }
  func.func @transform_0(%arg0: i32, %arg1: i32) -> (i32, i32) {
    %c1_i32 = arith.constant 1 : i32
    %0 = arith.muli %arg0, %c1_i32 : i32
    %1 = arith.addi %0, %arg1 : i32
    %c0_i32 = arith.constant 0 : i32
    %c0_i32_0 = arith.constant 0 : i32
    return %1, %c0_i32 : i32, i32
  }
  func.func @transform_1(%arg0: i32, %arg1: i32) -> (i32, i32) {
    %c1_i32 = arith.constant 1 : i32
    %0 = arith.muli %arg0, %c1_i32 : i32
    %1 = arith.addi %0, %arg1 : i32
    %c0_i32 = arith.constant 0 : i32
    %c0_i32_0 = arith.constant 0 : i32
    return %1, %c0_i32 : i32, i32
  }
  func.func @transform_2(%arg0: i32, %arg1: i32) -> (i32, i32, i32) {
    %c0_i32 = arith.constant 0 : i32
    %c0_i32_0 = arith.constant 0 : i32
    %c0_i32_1 = arith.constant 0 : i32
    return %arg0, %c0_i32, %c0_i32_0 : i32, i32, i32
  }
}

</mosaic_0001>

<bundles_post_ra>
// kernel: tpu_custom_call.1
= control target key start
LH: loop header
LB: loop body
LE: loop exit
PB: predicated region body
PF: predicated region fallthrough
CT: control target
= control target key end

     0   :  { %7 = vsyncpa [#allocation3], 0  ;;  %s276_s0 = inlined_call_operand.hbm [shape: f32[16,128], index: 0, kind: input, shape index: {}]   ;;  %s277_s1 = inlined_call_operand.hbm [shape: f32[16,128], index: 1, kind: input, shape index: {}]   ;;  %s278_s2 = inlined_call_operand.hbm [shape: f32[1,16,128], index: 2, kind: output, shape index: {}]  }
   0x1   :  { %8 = vsyncpa [#allocation6], 0 }
   0x2   :  { %9 = vsyncpa [#allocation4], 0  ;;  %s204_s9 = smov [#allocation2]   ;;  %s132_s13 = scalar_lea.hbm %s276_s0, 256 }
   0x3   :  { %s19_s10 = sshll.u32 %s204_s9, 4  ;;  %p133_p0 = scmp.ne.s32.totalorder %s276_s0, %s132_s13  ;;  %s20_s10 = int_to_ptr.vmem [resolvable:$true] %s19_s10 }
   0x4   :  { %p136_p1 = scmp.lt.u32.totalorder %s132_s13, %s276_s0 }
   0x6   :  { %p138_p2 = pnand %p136_p1, %p133_p0 }
   0x8   :  { %141 = shalt.err (!%p138_p2)
}
   0x9   :  { %s142_s18 = scalar_lea.vmem %s20_s10, 256  ;;  %p147_p4 = scmp.lt.s32.totalorder %s20_s10, %s20_s10 }
   0xa   :  { %p143_p3 = scmp.ne.s32.totalorder %s20_s10, %s142_s18  ;;  %p148_p5 = scmp.lt.s32.totalorder %s142_s18, %s142_s18 }
   0xc   :  { %p149_p6 = por %p148_p5, %p147_p4 }
   0xe   :  { %p150_p7 = pnand %p149_p6, %p143_p3 }
  0x10   :  { %153 = shalt.err (!%p150_p7)
}
  0x11   :  { %s205_s19 = smov 128   ;;  %s206_s20 = smov 8  }
  0x12   :  { %25 = dma.hbm_to_vmem [thread:$0]  %s276_s0, 256, %s20_s10, [#allocation3], %s205_s19, %s205_s19, %s206_s20  }
  0x13   :  { %s207_s23 = smov [#allocation5]   ;;  %s154_s27 = scalar_lea.hbm %s277_s1, 256 }
  0x14   :  { %s35_s24 = sshll.u32 %s207_s23, 4  ;;  %p155_p8 = scmp.ne.s32.totalorder %s277_s1, %s154_s27  ;;  %s36_s24 = int_to_ptr.vmem [resolvable:$true] %s35_s24 }
  0x15   :  { %p158_p9 = scmp.lt.u32.totalorder %s154_s27, %s277_s1 }
  0x17   :  { %p160_p10 = pnand %p158_p9, %p155_p8 }
  0x19   :  { %163 = shalt.err (!%p160_p10)
}
  0x1a   :  { %s164_s4 = scalar_lea.vmem %s36_s24, 256  ;;  %p169_p12 = scmp.lt.s32.totalorder %s36_s24, %s36_s24 }
  0x1b   :  { %p165_p11 = scmp.ne.s32.totalorder %s36_s24, %s164_s4  ;;  %p170_p13 = scmp.lt.s32.totalorder %s164_s4, %s164_s4 }
  0x1d   :  { %p171_p0 = por %p170_p13, %p169_p12 }
  0x1f   :  { %p172_p1 = pnand %p171_p0, %p165_p11 }
  0x21   :  { %175 = shalt.err (!%p172_p1)
}
  0x22   :  { %41 = dma.hbm_to_vmem [thread:$0]  %s277_s1, 256, %s36_s24, [#allocation6], %s205_s19, %s205_s19, %s206_s20  }
  0x23   :  { %198 = dma.done.wait [#allocation3], 256  }
  0x24   :  { %199 = vsyncadd [#allocation3], 4294967040 }
  0x25   :  { %200 = dma.done.wait [#allocation6], 256  }
  0x26   :  { %201 = vsyncadd [#allocation6], 4294967040  ;;  %v58_v0 = vld [vmem:[#allocation2] sm:$0xff]  ;;  %v59_v1 = vld [vmem:[#allocation2 + $0x8] sm:$0xff]  ;;  %v208_v8 = vmov 0.0   ;;  %s209_s1 = smov [#allocation7]  }
  0x27   :  { %v60_v2 = vld [vmem:[#allocation5] sm:$0xff]  ;;  %v61_v3 = vld [vmem:[#allocation5 + $0x8] sm:$0xff]  ;;  %v68_v4 = vsub.f32 1.0, %v58_v0  ;;  %v69_v5 = vsub.f32 1.0, %v59_v1  ;;  %s107_s6 = sshll.u32 %s209_s1, 4  ;;  %s108_s6 = int_to_ptr.vmem [resolvable:$true] %s107_s6 }
  0x28   :  { %vm62_vm0 = vcmp.eq.f32.partialorder %v60_v2, 1.0  ;;  %v76_v6 = vsub.f32 1.0, %v60_v2  ;;  %vm63_vm1 = vcmp.eq.f32.partialorder %v61_v3, 1.0  ;;  %v77_v7 = vsub.f32 1.0, %v61_v3  ;;  %s176_s7 = scalar_lea.vmem %s108_s6, 256  ;;  %p181_p3 = scmp.lt.s32.totalorder %s108_s6, %s108_s6 }
  0x29   :  { %v120_v9 = vsel %vm62_vm0, 1.0, %v208_v8  ;;  %v70_v10 = vsel %vm62_vm0, %v58_v0, %v68_v4  ;;  %v71_v11 = vsel %vm63_vm1, %v59_v1, %v69_v5  ;;  %v121_v13 = vsel %vm63_vm1, 1.0, %v208_v8  ;;  %p177_p2 = scmp.ne.s32.totalorder %s108_s6, %s176_s7  ;;  %p182_p4 = scmp.lt.s32.totalorder %s176_s7, %s176_s7 }
  0x2a   :  { %v78_v12 = vmax.f32 %v76_v6, 0.0  ;;  %v79_v14 = vmax.f32 %v77_v7, 0.0  ;;  %128 = vlog2.f32 %v70_v10  ;;  %v72_v15 = vsub.f32 1.0, %v70_v10 }
  0x2b   :  { %130 = vlog2.f32 %v71_v11  ;;  %v95_v17 = vadd.f32 %v121_v13, %v120_v9  ;;  %v73_v18 = vsub.f32 1.0, %v71_v11  ;;  %p183_p5 = por %p182_p4, %p181_p3 }
  0x2c   :  { %v80_v16 = vmul.f32 %v78_v12, %v78_v12  ;;  %v81_v19 = vmul.f32 %v79_v14, %v79_v14  ;;  %v74_v22 = vmul.f32 %v72_v15, %v72_v15 }
  0x2d   :  { %101 = vst [vmem:[#allocation7 + $0x8] sm:$0xff] %v95_v17  ;;  %v75_v23 = vmul.f32 %v73_v18, %v73_v18  ;;  %p184_p6 = pnand %p183_p5, %p177_p2 }
  0x2e   :  { %v82_v20 = vmul.f32 %v80_v16, %v80_v16  ;;  %v83_v21 = vmul.f32 %v81_v19, %v81_v19 }
  0x30   :  { %v84_v24 = vsel %vm62_vm0, 1.0, %v82_v20  ;;  %v85_v25 = vsel %vm63_vm1, 1.0, %v83_v21 }
  0x31   :  { %v86_v26 = vmul.f32 %v84_v24, %v74_v22  ;;  %v87_v28 = vmul.f32 %v85_v25, %v75_v23 }
  0x34   :  { %v129_v27 = vpop.eup %128 }
  0x35   :  { %v131_v29 = vpop.eup %130  ;;  %v89_v30 = vmul.f32 0.6931472, %v129_v27 }
  0x36   :  { %v91_v31 = vmul.f32 0.6931472, %v131_v29 }
  0x37   :  { %v92_v32 = vmul.f32 %v89_v30, %v86_v26 }
  0x38   :  { %v93_v33 = vmul.f32 %v91_v31, %v87_v28 }
  0x3a   :  { %v94_v34 = vadd.f32 %v93_v33, %v92_v32 }
  0x3c   :  { %98 = vst [vmem:[#allocation7] sm:$0xff] %v94_v34 }
  0x3d   :  { %187 = shalt.err (!%p184_p6)
}
  0x3e   :  { %s188_s10 = scalar_lea.hbm %s278_s2, 256 }
  0x3f   :  { %p189_p7 = scmp.ne.s32.totalorder %s278_s2, %s188_s10  ;;  %p192_p8 = scmp.lt.u32.totalorder %s188_s10, %s278_s2 }
  0x41   :  { %p194_p9 = pnand %p192_p8, %p189_p7 }
  0x43   :  { %197 = shalt.err (!%p194_p9)
}
  0x44   :  { %113 = dma.vmem_to_hbm [thread:$0]  %s108_s6, 256, %s278_s2, [#allocation4], %s205_s19, %s205_s19, %s206_s20  }
  0x45   :  { %202 = dma.done.wait [#allocation4], 256  }
  0x46   :  { %203 = vsyncadd [#allocation4], 4294967040 }
  0x47   :  { %117 = vsyncpa [#allocation3], 1 }
  0x48   :  { %118 = vsyncpa [#allocation6], 1 }
  0x49   :  { %119 = vsyncpa [#allocation4], 1 }

</bundles_post_ra>
